<compile_context>
chip_gen: v7x
topology: tpu7x:2x2x1
jax: 0.10.0
libtpu: 0.0.40
codegen_flags: <defaults>
</compile_context>

<pallas_src>
import jax
import jax.numpy as jnp
from jax import lax
from jax.experimental import pallas as pl
from jax.experimental.pallas import tpu as pltpu


# ---------------------------------------------------------------------------
# Hardware queries (robust fallbacks so the script never fails to build).
# ---------------------------------------------------------------------------
def _num_tensorcores():
    """Number of TensorCores per chip (2 only on v7x-class parts)."""
    try:
        info = pltpu.get_tpu_info()
        for name in ("num_cores", "core_count", "num_tensorcores"):
            v = getattr(info, name, None)
            if isinstance(v, int) and v > 0:
                return v
    except Exception:
        pass
    try:
        d = jax.devices()[0]
        for name in ("num_cores", "core_count"):
            v = getattr(d, name, None)
            if isinstance(v, int) and v > 0:
                return v
    except Exception:
        pass
    return 1


def _vmem_budget_bytes():
    """Per-kernel VMEM budget: half of physical capacity (64 MiB on v5e/v6e,
    32 MiB on v7x), conservative fallback if the query is unavailable."""
    cap = None
    try:
        cap = pltpu.get_tpu_info().vmem_capacity_bytes
    except Exception:
        cap = None
    if not cap:
        cap = 64 << 20  # conservative: v7x physical VMEM
    return int(cap) // 2


def _round_up(v, m):
    return ((v + m - 1) // m) * m


# ---------------------------------------------------------------------------
# Stage 1: hoisted input projection  xproj = x2d @ W_xh + b  (single big matmul)
# ---------------------------------------------------------------------------
def _proj_kernel(x_ref, w_ref, b_ref, o_ref):
    # x_ref: (tm, D), w_ref: (D, Hp), b_ref: (1, Hp) f32, o_ref: (tm, Hp)
    # Operands fed to the MXU in their native (compute) dtype; f32 accumulation.
    o_ref[...] = (
        jnp.dot(x_ref[...], w_ref[...], preferred_element_type=jnp.float32)
        + b_ref[...]
    ).astype(o_ref.dtype)


def _pick_row_tile(M, D, Hp, in_isize, out_isize, budget):
    """Largest row tile (<= 512) whose double-buffered blocks fit the budget."""
    if M <= 512:
        return M
    tm = 512

    def fits(t):
        return (2 * t * D * in_isize          # x block, double-buffered
                + 2 * D * Hp * in_isize       # resident W_xh (counted x2, safe)
                + 2 * t * Hp * out_isize      # out block, double-buffered
                + 2 * Hp * 4) <= budget       # bias

    while tm > 128 and not fits(tm):
        tm //= 2
    return tm


def _input_projection(x2d, w_xh_p, b_p, out_dtype, budget):
    """x2d: (M, D), w_xh_p: (D, Hp), b_p: (Hp,) f32 -> (M, Hp) in out_dtype."""
    M, D = x2d.shape
    Hp = w_xh_p.shape[1]
    tm = _pick_row_tile(M, D, Hp, x2d.dtype.itemsize,
                        jnp.dtype(out_dtype).itemsize, budget)
    # TODO(synk): add a K (D) grid axis with an f32 accumulator when D*Hp is
    # too large to keep W_xh resident (matters on v7x's 64 MiB VMEM).
    grid = (pl.cdiv(M, tm),)
    return pl.pallas_call(
        _proj_kernel,
        out_shape=jax.ShapeDtypeStruct((M, Hp), out_dtype),
        grid_spec=pltpu.PrefetchScalarGridSpec(
            num_scalar_prefetch=0,
            grid=grid,
            in_specs=[
                pl.BlockSpec((tm, D), lambda i: (i, 0)),    # activations, row-tiled
                pl.BlockSpec((D, Hp), lambda i: (0, 0)),    # W_xh, resident
                pl.BlockSpec((1, Hp), lambda i: (0, 0)),    # bias, resident
            ],
            out_specs=pl.BlockSpec((tm, Hp), lambda i: (i, 0)),
        ),
        compiler_params=pltpu.CompilerParams(
            dimension_semantics=("parallel",),
            vmem_limit_bytes=budget,
        ),
    )(x2d, w_xh_p, b_p.reshape(1, Hp))


# ---------------------------------------------------------------------------
# Stage 2: recurrence  h_t = tanh(xproj_t + h_{t-1} @ W_hh)
# ---------------------------------------------------------------------------
def _pick_time_block(T, Bb, Hp, xp_isize, y_isize, whh_isize, budget):
    """VMEM-aware time-block size.  Returns (Tt, need_mask).  If no good
    divisor of T is available, T is padded and the tail is masked."""
    fixed = (2 * Hp * Hp * whh_isize       # resident W_hh (counted x2, safe)
             + 2 * Bb * Hp * 4             # h0
             + 2 * Bb * Hp * y_isize       # final-h output
             + Bb * Hp * 4)                # f32 hidden scratch
    per_step = 2 * Bb * Hp * xp_isize + 2 * Bb * Hp * y_isize  # xproj + y, dbuf
    tt_max = max(1, (budget - fixed) // per_step)
    tt_cap = max(1, min(T, 256, tt_max))
    candidates = [c for c in (256, 128, 64, 32, 16, 8, 4, 2, 1) if c <= tt_cap]
    tt_any = candidates[0]
    tt_div = next((c for c in candidates if T % c == 0), 1)
    if 2 * tt_div >= tt_any:
        return tt_div, False          # divisor is good enough: no padding
    return tt_any, True               # pad T up to a multiple of tt_any + mask


def _make_recurrent_kernel(T_true, Tt, need_mask, hoist_whh, half):
    """Builds the stage-2 kernel.

    xp_ref   : (Tt, Bb, Hp)  pre-projected inputs (bias already folded in)
    whh_ref  : (Hp, Hp)      recurrent weight, resident (constant block index)
    h0_ref   : (Bb, Hp) f32  initial hidden state block
    y_ref    : (Tt, Bb, Hp)  per-step output block
    h_out_ref: (Bb, Hp)      final hidden state block (constant index -> resident)
    h_scratch: (Bb, Hp) f32  VMEM scratch carrying the recurrence

    `half > 0` -> compute two independent batch sub-chains per step so one
    chain's tanh (EUP) overlaps the other's matmul (MXU).
    """

    def kernel(xp_ref, whh_ref, h0_ref, y_ref, h_out_ref, h_scratch):
        ti = pl.program_id(1)

        @pl.when(ti == 0)
        def _init():
            h_scratch[...] = h0_ref[...].astype(jnp.float32)

        # Only hoist W_hh into a value when it comfortably fits the vreg file;
        # otherwise let Mosaic stream it from VMEM each step (avoids spills).
        whh_hoisted = whh_ref[...] if hoist_whh else None

        def chain(xp_t, h_prev, w):
            # Feed the MXU in the weight's native (compute) dtype; f32 accum.
            h_mm = h_prev if w.dtype == jnp.float32 else h_prev.astype(w.dtype)
            pre = xp_t.astype(jnp.float32) + jnp.dot(
                h_mm, w, preferred_element_type=jnp.float32)
            return jnp.tanh(pre)                                   # EUP, f32

        def step(t, carry):
            w = whh_hoisted if hoist_whh else whh_ref[...]
            xp_t = xp_ref[t]
            h_prev = h_scratch[...]
            if half:
                h_new_a = chain(xp_t[:half], h_prev[:half], w)
                h_new_b = chain(xp_t[half:], h_prev[half:], w)
                h_new = jnp.concatenate([h_new_a, h_new_b], axis=0)
            else:
                h_new = chain(xp_t, h_prev, w)
            if need_mask:
                valid = (ti * Tt + t) < T_true
                h_new = jnp.where(valid, h_new, h_prev)
            h_scratch[...] = h_new
            y_ref[t] = h_new.astype(y_ref.dtype)
            return carry

        # Capped unroll: amortizes grid/DMA overhead and gives the LLO
        # scheduler visibility without blowing up live ranges.
        lax.fori_loop(0, Tt, step, 0, unroll=min(Tt, 8))

        # Write the running hidden state back every time block (cheap, robust).
        h_out_ref[...] = h_scratch[...].astype(h_out_ref.dtype)

    return kernel


def rnn_forward_pallas(x, h0, w_xh, w_hh, b, *, compute_dtype=jnp.bfloat16):
    """x: (T, B, D), h0: (B, H) or None  ->  (y: (T, B, H), h_T: (B, H)).

    compute_dtype: dtype fed to the MXU (and used for the xproj HBM stream).
    Accumulation and the hidden-state carry are always f32."""
    T, B, D = x.shape
    H = w_xh.shape[1]
    out_dtype = x.dtype
    budget = _vmem_budget_bytes()

    # Lane/sublane-dense padded sizes (vreg tile is 8 sublanes x 128 lanes).
    Bp = max(8, _round_up(B, 8))
    Hp = max(128, _round_up(H, 128))

    # Zero-padding of the weights/bias is mathematically inert: padded hidden
    # columns stay exactly zero.  Padded batch rows / padded time steps are
    # computed but discarded (sliced off / masked), they never mix with real
    # rows.
    w_xh_p = jnp.zeros((D, Hp), compute_dtype).at[:, :H].set(
        w_xh.astype(compute_dtype))
    w_hh_p = jnp.zeros((Hp, Hp), compute_dtype).at[:H, :H].set(
        w_hh.astype(compute_dtype))
    b_p = jnp.zeros((Hp,), jnp.float32).at[:H].set(b.astype(jnp.float32))

    if h0 is None:
        h0_p = jnp.zeros((Bp, Hp), jnp.float32)
    else:
        h0_p = jnp.zeros((Bp, Hp), jnp.float32).at[:B, :H].set(
            h0.astype(jnp.float32))

    # --- Generation-gated batch split: only pays when there are >= 2 TCs. ---
    num_tc = _num_tensorcores()
    n_bb = 2 if (num_tc >= 2 and Bp >= 16 and Bp % 16 == 0) else 1
    Bb = Bp // n_bb
    # TODO(synk): on multi-TC chips, consider pltpu.CORE_PARALLEL / core_map on
    # the batch-block axis; plain "parallel" may not actually shard it.

    # --- VMEM-aware time-block size (pad + mask when T has no good divisor) --
    xp_isize = jnp.dtype(compute_dtype).itemsize
    y_isize = jnp.dtype(out_dtype).itemsize
    Tt, need_mask = _pick_time_block(T, Bb, Hp, xp_isize, y_isize, xp_isize,
                                     budget)
    T_pad = _round_up(T, Tt)
    n_tb = T_pad // Tt

    # Pad batch and time, cast the MXU operand to compute_dtype.
    x_p = x
    if B != Bp or T != T_pad:
        x_p = jnp.pad(x, ((0, T_pad - T), (0, Bp - B), (0, 0)))
    x_p = x_p.astype(compute_dtype)

    # --- Stage 1: one large batched matmul for the input projection ---------
    # TODO(synk): optionally fuse stage 1 into stage 2 (compute xproj per time
    # block with W_xh resident) to eliminate the xproj HBM round trip.
    xproj = _input_projection(x_p.reshape(T_pad * Bp, D), w_xh_p, b_p,
                              compute_dtype, budget)
    xproj = xproj.reshape(T_pad, Bp, Hp)

    # --- Stage 2: the sequential recurrence, time-blocked --------------------
    hoist_whh = Hp * Hp * xp_isize <= 64 * 1024        # <= 1/4 of the vreg file
    half = Bb // 2 if (Bb >= 16 and Bb % 16 == 0) else 0
    kernel = _make_recurrent_kernel(T, Tt, need_mask, hoist_whh, half)

    grid_spec = pltpu.PrefetchScalarGridSpec(
        num_scalar_prefetch=0,
        grid=(n_bb, n_tb),
        in_specs=[
            pl.BlockSpec((Tt, Bb, Hp), lambda bi, ti: (ti, bi, 0)),  # xproj block
            pl.BlockSpec((Hp, Hp), lambda bi, ti: (0, 0)),           # W_hh (resident)
            pl.BlockSpec((Bb, Hp), lambda bi, ti: (bi, 0)),          # h0 block
        ],
        out_specs=[
            pl.BlockSpec((Tt, Bb, Hp), lambda bi, ti: (ti, bi, 0)),  # y block
            pl.BlockSpec((Bb, Hp), lambda bi, ti: (bi, 0)),          # final h block
        ],
        scratch_shapes=[pltpu.VMEM((Bb, Hp), jnp.float32)],
    )

    y_p, h_T_p = pl.pallas_call(
        kernel,
        out_shape=(
            jax.ShapeDtypeStruct((T_pad, Bp, Hp), out_dtype),
            jax.ShapeDtypeStruct((Bp, Hp), out_dtype),
        ),
        grid_spec=grid_spec,
        compiler_params=pltpu.CompilerParams(
            # batch blocks are independent; the time axis carries the recurrence
            dimension_semantics=("parallel", "arbitrary"),
            vmem_limit_bytes=budget,
        ),
    )(xproj, w_hh_p, h0_p)

    return y_p[:T, :B, :H], h_T_p[:B, :H]


# ---------------------------------------------------------------------------
# Module mirroring the PyTorch RNN base-class dispatch semantics.
# ---------------------------------------------------------------------------
class PallasRNN:
    """Mirrors the PyTorch RNN base-class dispatch semantics with a concrete
    Elman-cell `rnn_forward` implemented as Pallas TPU kernels.

    Hidden-state convention is nn.RNN-like: (num_layers=1, B, H), so
    predict_single's h[None, None] / h[0, 0] round-trips cleanly."""

    def __init__(self, ipt_shape, hidden_size, key, compute_dtype=jnp.bfloat16):
        self.ipt_shape = (tuple(ipt_shape) if hasattr(ipt_shape, "__len__")
                          else (ipt_shape,))
        self.hidden_size = hidden_size
        self.compute_dtype = compute_dtype
        D = self.ipt_shape[-1]
        H = hidden_size
        k1, k2, k3 = jax.random.split(key, 3)
        scale = 1.0 / jnp.sqrt(H)
        # Deterministic synthetic parameters (nn.RNNCell-like init), kept f32.
        self.w_xh = jax.random.uniform(k1, (D, H), jnp.float32, -scale, scale)
        self.w_hh = jax.random.uniform(k2, (H, H), jnp.float32, -scale, scale)
        self.b = jax.random.uniform(k3, (H,), jnp.float32, -scale, scale)

    @property
    def ipt_ndim(self):
        return len(self.ipt_shape)

    @property
    def out_shape(self):
        return (self.hidden_size,)

    def __call__(self, x, h=None):
        return self.forward(x, h=h)

    def forward(self, x, h=None):
        if x.ndim == self.ipt_ndim:
            return self.predict_single(x, h=h)
        else:
            return self.predict_batch(x, h=h)

    def get_h0(self, x=None):
        # Concrete choice: None -> zero initial hidden state inside rnn_forward.
        return None

    def predict_single(self, x, h=None):
        x = x[None, None]
        h = h if h is None else h[None, None]
        x, h = self.predict_batch(x, h)
        x = x[0, 0]
        h = h if h is None else h[0, 0]
        return (x, h)

    def predict_batch(self, x, h=None):
        h0 = self.get_h0(x) if h is None else h
        # Pass h0 (not h): identical behavior since get_h0() returns None, but
        # avoids the latent bug of dropping a non-None get_h0 result.
        return self.rnn_forward(x, h0)

    def rnn_forward(self, x, h):
        # x: (T, B, D); h: None or (1, B, H)
        h0 = None if h is None else jnp.asarray(h)[0]
        y, h_T = rnn_forward_pallas(x, h0, self.w_xh, self.w_hh, self.b,
                                    compute_dtype=self.compute_dtype)
        return y, h_T[None]


def _ref_forward(x, h0, w_xh, w_hh, b):
    """Pure-JAX f32 reference for correctness checks."""
    def step(h, x_t):
        h_new = jnp.tanh(x_t @ w_xh + h @ w_hh + b)
        return h_new, h_new
    h_T, ys = lax.scan(step, h0, x)
    return ys, h_T


if __name__ == "__main__":
    key = jax.random.PRNGKey(0)
    k_param, k_x1, k_x2, k_xs = jax.random.split(key, 4)

    D, H = 16, 32

    # ---- 1) f32 reference mode: bit-tight check of the kernel structure ----
    model_f32 = PallasRNN(ipt_shape=(D,), hidden_size=H, key=k_param,
                          compute_dtype=jnp.float32)
    T1, B1 = 8, 2
    x1 = jax.random.normal(k_x1, (T1, B1, D), dtype=jnp.float32)
    y1, h1 = model_f32(x1)
    y1 = jax.block_until_ready(y1)
    h1 = jax.block_until_ready(h1)
    y1_ref, h1_ref = _ref_forward(x1, jnp.zeros((B1, H), jnp.float32),
                                  model_f32.w_xh, model_f32.w_hh, model_f32.b)
    assert y1.shape == (T1, B1, H)
    assert h1.shape == (1, B1, H)
    assert jnp.allclose(y1, y1_ref, atol=1e-5, rtol=1e-5)
    assert jnp.allclose(h1[0], h1_ref, atol=1e-5, rtol=1e-5)

    # ---- 2) bf16 (default, fast) mode: non-divisible T + larger batch ------
    # Exercises T-padding + tail masking and the dual-chain interleave path.
    model = PallasRNN(ipt_shape=(D,), hidden_size=H, key=k_param)
    T2, B2 = 10, 16
    x2 = jax.random.normal(k_x2, (T2, B2, D), dtype=jnp.float32)
    y2, h2 = model(x2)
    y2 = jax.block_until_ready(y2)
    h2 = jax.block_until_ready(h2)
    y2_ref, h2_ref = _ref_forward(x2, jnp.zeros((B2, H), jnp.float32),
                                  model.w_xh, model.w_hh, model.b)
    assert y2.shape == (T2, B2, H)
    assert h2.shape == (1, B2, H)
    # bf16 MXU operands / bf16 xproj stream: tanh-bounded state, loose atol.
    assert jnp.allclose(y2, y2_ref, atol=1e-1)
    assert jnp.allclose(h2[0], h2_ref, atol=1e-1)

    # ---- 3) single-step path: exercises the x[None, None] dispatch ---------
    x_s = jax.random.normal(k_xs, (D,), dtype=jnp.float32)
    y_s, h_s = model(x_s)
    jax.block_until_ready(y_s)
    assert y_s.shape == (H,)
    assert h_s.shape == (H,)
    y_s_ref, _ = _ref_forward(x_s[None, None], jnp.zeros((1, H), jnp.float32),
                              model.w_xh, model.w_hh, model.b)
    assert jnp.allclose(y_s, y_s_ref[0, 0], atol=5e-2)

    print("KERNEL_OK")
</pallas_src>

<mosaic_0001>
module attributes {stable_mosaic.version = 11 : i64} {
  func.func @_proj_kernel(%arg0: i32, %arg1: memref<64x16xf32, #tpu.memory_space<vmem>>, %arg2: memref<16x128xf32, #tpu.memory_space<vmem>>, %arg3: memref<1x128xf32, #tpu.memory_space<vmem>>, %arg4: memref<64x128xf32, #tpu.memory_space<vmem>>) attributes {dimension_semantics = [#tpu.dimension_semantics<parallel>], iteration_bounds = array<i64: 1>, scalar_prefetch = 0 : i64, scratch_operands = 0 : i64, tpu.core_type = #tpu.core_type<tc>, window_params = [{transform_indices = @transform_0, window_bounds = array<i64: 64, 16>}, {pipeline_mode = #tpu.pipeline_mode<synchronous>, transform_indices = @transform_1, window_bounds = array<i64: 16, 128>}, {pipeline_mode = #tpu.pipeline_mode<synchronous>, transform_indices = @transform_2, window_bounds = array<i64: 1, 128>}, {transform_indices = @transform_3, window_bounds = array<i64: 64, 128>}]} {
    %c0 = arith.constant 0 : index
    %c0_0 = arith.constant 0 : index
    %0 = vector.load %arg1[%c0, %c0_0] : memref<64x16xf32, #tpu.memory_space<vmem>>, vector<64x16xf32>
    %c0_1 = arith.constant 0 : index
    %c0_2 = arith.constant 0 : index
    %1 = vector.load %arg2[%c0_1, %c0_2] : memref<16x128xf32, #tpu.memory_space<vmem>>, vector<16x128xf32>
    %cst = arith.constant dense<0.000000e+00> : vector<64x128xf32>
    %2 = tpu.matmul %0, %1, %cst {dimension_numbers = #tpu.dot_dimension_numbers<[1], [0], [0], [1], [0, 0, 1, 1], [], []>} : vector<64x16xf32>, vector<16x128xf32>, vector<64x128xf32> -> vector<64x128xf32>
    %c0_3 = arith.constant 0 : index
    %c0_4 = arith.constant 0 : index
    %3 = vector.load %arg3[%c0_3, %c0_4] : memref<1x128xf32, #tpu.memory_space<vmem>>, vector<1x128xf32>
    %4 = vector.broadcast %3 : vector<1x128xf32> to vector<64x128xf32>
    %5 = arith.addf %2, %4 : vector<64x128xf32>
    %c0_5 = arith.constant 0 : index
    %c0_6 = arith.constant 0 : index
    %6 = vector.load %arg4[%c0_5, %c0_6] : memref<64x128xf32, #tpu.memory_space<vmem>>, vector<64x128xf32>
    tpu.vector_store %arg4[%c0_5, %c0_6], %5 {strides = array<i32>} : memref<64x128xf32, #tpu.memory_space<vmem>>, vector<64x128xf32>,
    return
  }
  func.func @transform_0(%arg0: i32) -> (i32, i32) {
    %c0_i32 = arith.constant 0 : i32
    %c0_i32_0 = arith.constant 0 : i32
    return %arg0, %c0_i32 : i32, i32
  }
  func.func @transform_1(%arg0: i32) -> (i32, i32) {
    %c0_i32 = arith.constant 0 : i32
    %c0_i32_0 = arith.constant 0 : i32
    %c0_i32_1 = arith.constant 0 : i32
    return %c0_i32, %c0_i32_0 : i32, i32
  }
  func.func @transform_2(%arg0: i32) -> (i32, i32) {
    %c0_i32 = arith.constant 0 : i32
    %c0_i32_0 = arith.constant 0 : i32
    %c0_i32_1 = arith.constant 0 : i32
    return %c0_i32, %c0_i32_0 : i32, i32
  }
  func.func @transform_3(%arg0: i32) -> (i32, i32) {
    %c0_i32 = arith.constant 0 : i32
    %c0_i32_0 = arith.constant 0 : i32
    return %arg0, %c0_i32 : i32, i32
  }
}

</mosaic_0001>

<bundles_post_ra>
// kernel: tpu_custom_call.1
= control target key start
LH: loop header
LB: loop body
LE: loop exit
PB: predicated region body
PF: predicated region fallthrough
CT: control target
= control target key end

     0   :  { %vm32_vm0 = vcmask 130048   ;;  %s330_s0 = inlined_call_operand.vmem [shape: f32[64,16], index: 0, kind: input, shape index: {}]   ;;  %s331_s1 = inlined_call_operand.vmem [shape: f32[16,128], index: 1, kind: input, shape index: {}]   ;;  %s332_s2 = inlined_call_operand.vmem [shape: f32[1,128], index: 2, kind: input, shape index: {}]   ;;  %s333_s3 = inlined_call_operand.hbm [shape: f32[64,128], index: 3, kind: output, shape index: {}]  }
   0x1   :  { %v23_v0 = vld [vmem:[%s331_s1] sm:$0xff]  ;;  %v24_v1 = vld [vmem:[%s331_s1 + $0x8] sm:$0xff] }
   0x2   :  { %v15_v2 = vld [vmem:[%s330_s0] sm:$0xff]  ;;  %v221_v3 = vpack.c.bf16 %v24_v1, %v23_v0 }
   0x3   :  { %209 = vmatprep.mubr.msk.f32.mxu0 %vm32_vm0, %v15_v2  ;;  %v19_v4 = vld [vmem:[%s330_s0 + $0x20] sm:$0xff] }
   0x4   :  { %215 = vmatprep.mubr.msk.f32.mxu1 %vm32_vm0, %v19_v4  ;;  %222 = vmatprep.subr.bf16.mxu0 %v221_v3 }
   0x5   :  { %225 = vmatprep.subr.bf16.mxu1 %v221_v3 }
   0x6   :  { %8 = vsyncpa [#allocation3], 0  ;;  %224 = vmatpush3.bf16.msra.mxu0 %v221_v3  ;;  %226 = vmatpush3.bf16.msra.mxu1 %v221_v3  ;;  %v16_v5 = vld [vmem:[%s330_s0 + $0x8] sm:$0xff]  ;;  %v17_v7 = vld [vmem:[%s330_s0 + $0x10] sm:$0xff]  ;;  %s254_s6 = smov [#allocation2]  }
   0x7   :  { %v20_v6 = vld [vmem:[%s330_s0 + $0x28] sm:$0xff]  ;;  %v21_v8 = vld [vmem:[%s330_s0 + $0x30] sm:$0xff]  ;;  %v18_v9 = vld [vmem:[%s330_s0 + $0x18] sm:$0xff]  ;;  %s175_s7 = sshll.u32 %s254_s6, 4  ;;  %s176_s7 = int_to_ptr.vmem [resolvable:$true] %s175_s7 }
   0x8   :  { %v22_v10 = vld [vmem:[%s330_s0 + $0x38] sm:$0xff]  ;;  %v186_v11 = vld [vmem:[%s332_s2] ss:$0 sm:$0xff]  ;;  %s230_s0 = scalar_lea.vmem %s176_s7, 1024  ;;  %p235_p1 = scmp.lt.s32.totalorder %s176_s7, %s176_s7 }
   0x9   :  { %210 = vmatmul.mubr.msk.f32.vlgmr.msra.gmra.mrb[0].mxu0 %vm32_vm0, %v16_v5  ;;  %216 = vmatmul.mubr.msk.f32.vlgmr.msra.gmra.mrb[0].mxu1 %vm32_vm0, %v20_v6  ;;  %p231_p0 = scmp.ne.s32.totalorder %s176_s7, %s230_s0  ;;  %p236_p2 = scmp.lt.s32.totalorder %s230_s0, %s230_s0 }
   0xa   :  { %212 = vmatprep.mubr.msk.f32.mxu0 %vm32_vm0, %v17_v7  ;;  %218 = vmatprep.mubr.msk.f32.mxu1 %vm32_vm0, %v21_v8 }
   0xb   :  { %p237_p3 = por %p236_p2, %p235_p1 }
   0xd   :  { %213 = vmatmul.mubr.msk.f32.gmra.mrb[2].mxu0 %vm32_vm0, %v18_v9  ;;  %219 = vmatmul.mubr.msk.f32.gmra.mrb[2].mxu1 %vm32_vm0, %v22_v10  ;;  %p238_p4 = pnand %p237_p3, %p231_p0 }
  0xdc   :  { %v211_v12 = vpop.f32.mrb[0].mxu0  ;;  %v217_v13 = vpop.f32.mrb[0].mxu1 }
  0xdd   :  { %v129_v14 = vadd.f32 %v211_v12, %v186_v11  ;;  %v149_v15 = vadd.f32 %v217_v13, %v186_v11  ;;  %v123_v16 = vpop.f32.mrb[1].mxu0  ;;  %v143_v17 = vpop.f32.mrb[1].mxu1 }
  0xde   :  { %v124_v18 = vadd.f32 %v186_v11, %v123_v16  ;;  %v144_v19 = vadd.f32 %v186_v11, %v143_v17 }
  0xdf   :  { %163 = vst [vmem:[#allocation2 + $0x8] sm:$0xff] %v129_v14  ;;  %167 = vst [vmem:[#allocation2 + $0x28] sm:$0xff] %v149_v15 }
  0xe0   :  { %162 = vst [vmem:[#allocation2] sm:$0xff] %v124_v18  ;;  %166 = vst [vmem:[#allocation2 + $0x20] sm:$0xff] %v144_v19  ;;  %v214_v20 = vpop.f32.mrb[2].mxu0  ;;  %v220_v21 = vpop.f32.mrb[2].mxu1 }
  0xe1   :  { %v139_v22 = vadd.f32 %v214_v20, %v186_v11  ;;  %v159_v23 = vadd.f32 %v220_v21, %v186_v11  ;;  %v133_v24 = vpop.f32.mrb[3].mxu0  ;;  %v153_v25 = vpop.f32.mrb[3].mxu1 }
  0xe2   :  { %v134_v26 = vadd.f32 %v186_v11, %v133_v24  ;;  %v154_v27 = vadd.f32 %v186_v11, %v153_v25 }
  0xe3   :  { %165 = vst [vmem:[#allocation2 + $0x18] sm:$0xff] %v139_v22  ;;  %169 = vst [vmem:[#allocation2 + $0x38] sm:$0xff] %v159_v23 }
  0xe4   :  { %164 = vst [vmem:[#allocation2 + $0x10] sm:$0xff] %v134_v26  ;;  %168 = vst [vmem:[#allocation2 + $0x30] sm:$0xff] %v154_v27 }
  0xe5   :  { %241 = shalt.err (!%p238_p4)
}
  0xe6   :  { %s242_s9 = scalar_lea.hbm %s333_s3, 1024 }
  0xe7   :  { %p243_p5 = scmp.ne.s32.totalorder %s333_s3, %s242_s9  ;;  %p246_p6 = scmp.lt.u32.totalorder %s242_s9, %s333_s3 }
  0xe9   :  { %p248_p7 = pnand %p246_p6, %p243_p5 }
  0xeb   :  { %251 = shalt.err (!%p248_p7)
}
  0xec   :  { %s255_s14 = smov 128   ;;  %s256_s15 = smov 8  }
  0xed   :  { %181 = dma.vmem_to_hbm [thread:$0]  %s176_s7, 1024, %s333_s3, [#allocation3], %s255_s14, %s255_s14, %s256_s15  }
  0xee   :  { %252 = dma.done.wait [#allocation3], 1024  }
  0xef   :  { %253 = vsyncadd [#allocation3], 4294966272 }
  0xf0   :  { %185 = vsyncpa [#allocation3], 1 }

</bundles_post_ra>
